<compile_context>
chip_gen: v5e
topology: v5e:2x2
jax: 0.10.0
libtpu: 0.0.40
codegen_flags: <defaults>
</compile_context>

<pallas_src>
import functools
import math

import jax
import jax.numpy as jnp
from jax import lax
from jax.experimental import pallas as pl
from jax.experimental.pallas import tpu as pltpu


LN_EPS = 1e-5                          # torch.nn.LayerNorm default

# Fused in-kernel one-hot gather only for tables that comfortably fit VMEM.
ONEHOT_MAX_VOCAB = 1024
ONEHOT_MAX_TABLE_BYTES = 2 * 1024 * 1024

# Per-step VMEM budget used to size the (batch x seq) block; conservative so
# double-buffered blocks + constant operands fit v7x (64 MiB physical) as well
# as v5e / v6e.
BLOCK_VMEM_BUDGET_BYTES = 12 * 1024 * 1024
VMEM_LIMIT_BYTES = 32 * 1024 * 1024

TEXT_TYPES = ('text', 'text_spectrum', 'peak_positional_encoding',
              'run_length_encoding', 'multiplets', 'carbon', 'msms_text')
PATCH_TYPES = ('1D_patches', 'msms_number')


def _round8_up(n):
    return ((n + 7) // 8) * 8


# ---------------------------------------------------------------------------
# In-kernel helpers
# ---------------------------------------------------------------------------
def _layernorm(x, gamma, beta, eps):
    mean = jnp.mean(x, axis=-1, keepdims=True)
    c = x - mean
    var = jnp.mean(c * c, axis=-1, keepdims=True)
    return c * lax.rsqrt(var + eps) * gamma + beta


def _finish(h, nums_ref, gamma_ref, beta_ref, pe_ref, out_ref, eps):
    """Shared tail: XVal scale -> LayerNorm (f32) -> pos-enc add -> cast+store."""
    if nums_ref is not None:
        h = h * nums_ref[...].astype(jnp.float32)                  # (B, bs, 1)
    if gamma_ref is not None:
        h = _layernorm(h, gamma_ref[...].astype(jnp.float32)[None],
                       beta_ref[...].astype(jnp.float32)[None], eps)
    if pe_ref is not None:
        h = h + pe_ref[...].astype(jnp.float32)[None]              # (1, bs, D)
    out_ref[...] = h.astype(out_ref.dtype)


def _embed_onehot_kernel(*refs, eps, has_nums, do_norm, has_pe, has_alias):
    """Small-vocab path: one-hot MXU gather (bf16 hi/lo split) + XVal + LN + PE."""
    it = iter(refs)
    ids_ref = next(it)
    nums_ref = next(it) if has_nums else None
    table_ref = next(it)
    gamma_ref = next(it) if do_norm else None
    beta_ref = next(it) if do_norm else None
    pe_ref = next(it) if has_pe else None
    if has_alias:
        next(it)                       # aliased full output buffer; untouched
    out_ref = next(it)

    bb, bs, _ = ids_ref.shape
    vocab, d = table_ref.shape

    ids = ids_ref[...].astype(jnp.int32).reshape(bb * bs, 1)
    iota = lax.broadcasted_iota(jnp.int32, (bb * bs, vocab), 1)
    # NOTE: ids outside [0, vocab) produce an all-zero row (torch would raise).
    onehot = (iota == ids).astype(jnp.bfloat16)          # exact 0/1 values

    # bf16 hi/lo split keeps the MXU on its native bf16 path (2 passes instead
    # of the 3-6 of f32xf32 emulation) while staying ~f32-exact for the table.
    tab = table_ref[...].astype(jnp.float32)
    t_hi = tab.astype(jnp.bfloat16)
    t_lo = (tab - t_hi.astype(jnp.float32)).astype(jnp.bfloat16)
    emb = (jnp.dot(onehot, t_hi, preferred_element_type=jnp.float32)
           + jnp.dot(onehot, t_lo, preferred_element_type=jnp.float32))
    h = emb.reshape(bb, bs, d)
    _finish(h, nums_ref, gamma_ref, beta_ref, pe_ref, out_ref, eps)


def _patch_linear_kernel(*refs, eps, has_nums, do_norm, has_pe, has_alias):
    """Patch path: Linear(P -> D) + XVal scale + LayerNorm + pos-enc."""
    it = iter(refs)
    x_ref = next(it)
    nums_ref = next(it) if has_nums else None
    w_ref = next(it)
    b_ref = next(it)
    gamma_ref = next(it) if do_norm else None
    beta_ref = next(it) if do_norm else None
    pe_ref = next(it) if has_pe else None
    if has_alias:
        next(it)
    out_ref = next(it)

    bb, bs, p = x_ref.shape
    d = w_ref.shape[1]
    x = x_ref[...].astype(jnp.float32)
    w = w_ref[...].astype(jnp.float32)
    b = b_ref[...].astype(jnp.float32)                   # (1, d)

    if p <= 8:
        # Tiny contraction (patch 2/4): unrolled VPU multiply-adds; the MXU
        # push/pop latency isn't worth a K=4 matmul.
        h = b.reshape(1, 1, d)
        for q in range(p):
            h = h + x[:, :, q:q + 1] * w[q, :].reshape(1, 1, d)
    else:
        h = (jnp.dot(x.reshape(bb * bs, p), w,
                     preferred_element_type=jnp.float32) + b).reshape(bb, bs, d)
    _finish(h, nums_ref, gamma_ref, beta_ref, pe_ref, out_ref, eps)


def _postproc_kernel(*refs, eps, has_nums, do_norm, has_pe, has_alias):
    """Large-vocab path: rows gathered by XLA; fuse scale + LN + PE + store."""
    it = iter(refs)
    emb_ref = next(it)
    nums_ref = next(it) if has_nums else None
    gamma_ref = next(it) if do_norm else None
    beta_ref = next(it) if do_norm else None
    pe_ref = next(it) if has_pe else None
    if has_alias:
        next(it)
    out_ref = next(it)
    _finish(emb_ref[...].astype(jnp.float32), nums_ref, gamma_ref, beta_ref,
            pe_ref, out_ref, eps)


# ---------------------------------------------------------------------------
# Constant sin/cos positional-encoding buffer (matches the PyTorch formula)
# ---------------------------------------------------------------------------
def sin_cos_positional_encoding(d_model, max_seq_len):
    dims = jnp.arange(0, d_model, 2, dtype=jnp.float32) / d_model
    inv = 10000.0 ** dims                                   # (d/2,)
    pos = jnp.arange(max_seq_len, dtype=jnp.float32)[:, None]
    ang = pos / inv[None, :]                                # (L, d/2)
    pe = jnp.stack([jnp.sin(ang), jnp.cos(ang)], axis=2)    # (L, d/2, 2)
    return pe.reshape(max_seq_len, -1)[:, :d_model]


# ---------------------------------------------------------------------------
# Module
# ---------------------------------------------------------------------------
class MultimodalEmbedding:
    """JAX/Pallas analogue of the PyTorch MultimodalEmbedding module."""

    def __init__(self, data_config, d_model, embedding_norm,
                 do_positional_encodings=False,
                 positional_encodings_type='sin_cos', max_seq_len=1024,
                 out_dtype=jnp.bfloat16, *, key):
        self.data_config = data_config
        self.d_model = d_model
        self.embedding_norm = embedding_norm
        self.do_positional_encodings = do_positional_encodings
        self.max_seq_len = max_seq_len
        self.out_dtype = out_dtype     # bf16 halves the dominant HBM store
        self.params = {}

        for modality, cfg in data_config.items():
            key, k1, k2, k3, k4 = jax.random.split(key, 5)
            p = {}
            if cfg['type'] in TEXT_TYPES:
                V = cfg['vocab_size']
                table = jax.random.normal(k1, (V, d_model), jnp.float32)
                pad = cfg.get('pad_token_id', None)
                if pad is not None:
                    table = table.at[pad].set(0.0)   # nn.Embedding padding_idx
                p['kind'] = 'embedding'
                p['table'] = table
            elif cfg['type'] in PATCH_TYPES:
                patch = (2 if cfg['type'] == 'msms_number'
                         else cfg['preprocessor_arguments']['patch_size'])
                enc = cfg.get('preprocessor_arguments', {}).get(
                    'encoding_type', 'linear')
                if enc != 'linear':
                    # TODO(synk): 'linear_2_layer'/'linear_3_layer' MLP patch
                    # encoders not implemented.
                    raise NotImplementedError(enc)
                scale = 1.0 / math.sqrt(patch)
                p['kind'] = 'linear'
                p['weight'] = jax.random.uniform(
                    k1, (patch, d_model), jnp.float32, -scale, scale)
                p['bias'] = jax.random.uniform(
                    k2, (1, d_model), jnp.float32, -scale, scale)
            else:
                raise NotImplementedError(cfg['type'])
            if embedding_norm:
                p['gamma'] = 1.0 + 0.1 * jax.random.normal(
                    k3, (1, d_model), jnp.float32)
                p['beta'] = 0.1 * jax.random.normal(
                    k4, (1, d_model), jnp.float32)
            self.params[modality] = p

        if do_positional_encodings:
            if positional_encodings_type == 'sin_cos':
                self.pos_enc = sin_cos_positional_encoding(d_model, max_seq_len)
            else:
                # TODO(synk): 'learned' positional encodings (Embedding +
                # LayerNorm over arange(seq_len)) not implemented.
                raise NotImplementedError(positional_encodings_type)
        else:
            self.pos_enc = None

    # -- block sizing ------------------------------------------------------
    def _block_token_cap(self, B):
        out_b = jnp.dtype(self.out_dtype).itemsize
        # double-buffered output block + one double-buffered f32 D-wide input
        per_token = 2 * self.d_model * (out_b + 4)
        cap = BLOCK_VMEM_BUDGET_BYTES // (per_token * max(int(B), 1))
        return max(8, (int(cap) // 8) * 8)

    def _choose_block_seq(self, B, seq_lens):
        cap = self._block_token_cap(B)
        if len(seq_lens) == 1:
            return min(cap, _round8_up(seq_lens[0]))
        g = 0
        for s in seq_lens[:-1]:        # last modality may end in a partial block
            g = math.gcd(g, s)
        if g % 8 != 0:
            return None                # boundaries not 8-alignable -> fallback
        best, d, lim = 8, 8, min(g, cap)
        while d <= lim:
            if g % d == 0:
                best = d
            d += 8
        return best

    # -- one fused pallas_call per modality --------------------------------
    def _run_modality(self, p, x, nums, bs, pe, pe_off_blocks,
                      out_buf, out_off_blocks):
        B, S = x.shape[0], x.shape[1]
        D = self.d_model
        n_blocks = pl.cdiv(S, bs)
        has_nums = nums is not None
        do_norm = self.embedding_norm
        has_pe = pe is not None
        has_alias = out_buf is not None

        inputs, in_specs = [], []
        flops = 0
        if p['kind'] == 'embedding':
            table = p['table']
            V = table.shape[0]
            use_onehot = (V <= ONEHOT_MAX_VOCAB
                          and table.size * 4 <= ONEHOT_MAX_TABLE_BYTES)
            if use_onehot:
                ids = x if x.dtype == jnp.int32 else x.astype(jnp.int32)
                inputs.append(ids.reshape(B, S, 1))
                in_specs.append(pl.BlockSpec((B, bs, 1), lambda s: (0, s, 0)))
                if has_nums:
                    inputs.append(nums.reshape(B, S, 1))
                    in_specs.append(pl.BlockSpec((B, bs, 1),
                                                 lambda s: (0, s, 0)))
                inputs.append(table)
                in_specs.append(pl.BlockSpec((V, D), lambda s: (0, 0)))
                kernel_fn = _embed_onehot_kernel
                flops += 4 * B * S * V * D        # two bf16 one-hot matmuls
            else:
                # Real vocabularies: row gather stays in XLA (a few MB of DMA
                # instead of a huge one-hot matmul / VMEM-resident table).
                emb = jnp.take(table, x, axis=0)
                inputs.append(emb)
                in_specs.append(pl.BlockSpec((B, bs, D), lambda s: (0, s, 0)))
                if has_nums:
                    inputs.append(nums.reshape(B, S, 1))
                    in_specs.append(pl.BlockSpec((B, bs, 1),
                                                 lambda s: (0, s, 0)))
                kernel_fn = _postproc_kernel
        else:                                      # patch linear
            P = p['weight'].shape[0]
            inputs.append(x)
            in_specs.append(pl.BlockSpec((B, bs, P), lambda s: (0, s, 0)))
            if has_nums:
                inputs.append(nums.reshape(B, S, 1))
                in_specs.append(pl.BlockSpec((B, bs, 1), lambda s: (0, s, 0)))
            inputs += [p['weight'], p['bias']]
            in_specs += [pl.BlockSpec((P, D), lambda s: (0, 0)),
                         pl.BlockSpec((1, D), lambda s: (0, 0))]
            kernel_fn = _patch_linear_kernel
            flops += 2 * B * S * P * D

        if do_norm:
            inputs += [p['gamma'], p['beta']]
            in_specs += [pl.BlockSpec((1, D), lambda s: (0, 0)),
                         pl.BlockSpec((1, D), lambda s: (0, 0))]
            flops += 10 * B * S * D
        if has_pe:
            inputs.append(pe)
            in_specs.append(pl.BlockSpec(
                (bs, D), lambda s, ob=pe_off_blocks: (s + ob, 0)))
            flops += B * S * D

        out_itemsize = jnp.dtype(self.out_dtype).itemsize
        bytes_accessed = (sum(int(a.size) * a.dtype.itemsize for a in inputs)
                          + B * S * D * out_itemsize)
        cost = pl.CostEstimate(flops=int(flops), transcendentals=int(B * S),
                               bytes_accessed=int(bytes_accessed))

        kernel = functools.partial(kernel_fn, eps=LN_EPS, has_nums=has_nums,
                                   do_norm=do_norm, has_pe=has_pe,
                                   has_alias=has_alias)

        if has_alias:
            # The shared output buffer is passed through untouched (raw HBM
            # ref, no DMA) purely so the output can alias it: our blocks get
            # written in place, other modalities' regions are preserved.
            alias_idx = len(inputs)
            inputs = inputs + [out_buf]
            in_specs = in_specs + [pl.BlockSpec(memory_space=pl.ANY)]
            io_alias = {alias_idx: 0}
            out_shape = jax.ShapeDtypeStruct(out_buf.shape, out_buf.dtype)
            out_spec = pl.BlockSpec(
                (B, bs, D), lambda s, ob=out_off_blocks: (0, s + ob, 0))
        else:
            io_alias = {}
            out_shape = jax.ShapeDtypeStruct((B, S, D), self.out_dtype)
            out_spec = pl.BlockSpec((B, bs, D), lambda s: (0, s, 0))

        return pl.pallas_call(
            kernel,
            out_shape=out_shape,
            grid_spec=pltpu.PrefetchScalarGridSpec(
                num_scalar_prefetch=0,
                grid=(n_blocks,),
                in_specs=in_specs,
                out_specs=out_spec),
            input_output_aliases=io_alias,
            compiler_params=pltpu.CompilerParams(
                dimension_semantics=("parallel",),
                vmem_limit_bytes=VMEM_LIMIT_BYTES),
            cost_estimate=cost,
        )(*inputs)

    # -- forward ------------------------------------------------------------
    def __call__(self, token_ids):
        if not token_ids:
            raise ValueError('At least one modality needs to be in token_ids.')
        entries = []
        for modality, minput in token_ids.items():
            if isinstance(minput, dict):
                x, nums = minput['tokenized_input'], minput['numerical_values']
            else:
                x, nums = minput, None
            entries.append((modality, x, nums))
        seq_lens = [int(e[1].shape[1]) for e in entries]
        B = entries[0][1].shape[0]
        S_total = sum(seq_lens)
        if self.do_positional_encodings:
            assert S_total <= self.max_seq_len, (S_total, self.max_seq_len)

        bs = self._choose_block_seq(B, seq_lens)
        if bs is not None:
            # Fast path: every modality offset is a multiple of bs, so each
            # fused kernel writes straight into one shared (B, S_total, D)
            # buffer (input_output_aliases) -> no final concatenate pass.
            out = jnp.zeros((B, S_total, self.d_model), self.out_dtype)
            offset = 0
            for (modality, x, nums), S in zip(entries, seq_lens):
                p = self.params[modality]
                pe = self.pos_enc if self.do_positional_encodings else None
                out = self._run_modality(p, x, nums, bs, pe, offset // bs,
                                         out, offset // bs)
                offset += S
            return out

        # Fallback: modality boundaries can't be aligned to 8-row blocks.
        # TODO(synk): this (rare) path still pays one concatenate copy.
        outs = []
        offset = 0
        for (modality, x, nums), S in zip(entries, seq_lens):
            p = self.params[modality]
            bs_m = min(self._block_token_cap(B), _round8_up(S))
            pe = (self.pos_enc[offset:offset + S]
                  if self.do_positional_encodings else None)
            outs.append(self._run_modality(p, x, nums, bs_m, pe, 0, None, 0))
            offset += S
        return jnp.concatenate(outs, axis=1)


# ---------------------------------------------------------------------------
# Pure-JAX reference for verification
# ---------------------------------------------------------------------------
def reference_forward(module, token_ids):
    embs = []
    for modality, minput in token_ids.items():
        p = module.params[modality]
        if isinstance(minput, dict):
            x, nums = minput['tokenized_input'], minput['numerical_values']
        else:
            x, nums = minput, None
        if p['kind'] == 'embedding':
            e = p['table'][x]
        else:
            e = x.astype(jnp.float32) @ p['weight'] + p['bias']
        if nums is not None:
            e = e * nums[..., None]
        if module.embedding_norm:
            e = e.astype(jnp.float32)
            mean = e.mean(-1, keepdims=True)
            var = ((e - mean) ** 2).mean(-1, keepdims=True)
            e = (e - mean) / jnp.sqrt(var + LN_EPS) * p['gamma'] + p['beta']
        embs.append(e)
    out = jnp.concatenate(embs, axis=1)
    if module.do_positional_encodings:
        out = out + module.pos_enc[:out.shape[1]][None]
    return out


# ---------------------------------------------------------------------------
if __name__ == "__main__":
    key = jax.random.PRNGKey(0)
    k_model, k_ids, k_nums, k_patch, k_big = jax.random.split(key, 5)

    d_model = 128          # multiple of 128 -> lane-dense output stores
    data_config = {
        "text": {"type": "text", "vocab_size": 64, "pad_token_id": 0},
        "spectrum": {"type": "1D_patches",
                     "preprocessor_arguments": {"patch_size": 4,
                                                "encoding_type": "linear"}},
        # Large vocabulary -> exercises the XLA-gather + fused-postproc path.
        "formula": {"type": "text", "vocab_size": 4096, "pad_token_id": 0},
    }

    model = MultimodalEmbedding(
        data_config, d_model, embedding_norm=True,
        do_positional_encodings=True, positional_encodings_type='sin_cos',
        max_seq_len=1024, out_dtype=jnp.bfloat16, key=k_model)

    B, S_text, S_spec, S_big, P = 2, 8, 8, 8, 4
    ids = jax.random.randint(k_ids, (B, S_text), 0, 64, dtype=jnp.int32)
    nums = 0.5 + jax.random.uniform(k_nums, (B, S_text), dtype=jnp.float32)
    patches = jax.random.normal(k_patch, (B, S_spec, P), dtype=jnp.float32)
    big_ids = jax.random.randint(k_big, (B, S_big), 0, 4096, dtype=jnp.int32)

    token_ids = {
        "text": {"tokenized_input": ids, "numerical_values": nums},  # XVal
        "spectrum": patches,                                         # plain
        "formula": big_ids,                                          # big vocab
    }

    out = jax.block_until_ready(model(token_ids))

    ref = reference_forward(model, token_ids)
    assert out.shape == (B, S_text + S_spec + S_big, d_model), out.shape
    assert out.dtype == jnp.bfloat16, out.dtype
    err = float(jnp.max(jnp.abs(out.astype(jnp.float32) - ref)))
    assert bool(jnp.allclose(out.astype(jnp.float32), ref,
                             atol=2e-2, rtol=2e-2)), err

    print("KERNEL_OK")
</pallas_src>

<mosaic_0001>
module attributes {stable_mosaic.version = 11 : i64} {
  func.func @_embed_onehot_kernel(%arg0: i32, %arg1: memref<2x8x1xi32, #tpu.memory_space<vmem>>, %arg2: memref<2x8x1xf32, #tpu.memory_space<vmem>>, %arg3: memref<64x128xf32, #tpu.memory_space<vmem>>, %arg4: memref<1x128xf32, #tpu.memory_space<vmem>>, %arg5: memref<1x128xf32, #tpu.memory_space<vmem>>, %arg6: memref<8x128xf32, #tpu.memory_space<vmem>>, %arg7: memref<2x24x128xbf16, #tpu.memory_space<any>>, %arg8: memref<2x8x128xbf16, #tpu.memory_space<vmem>>) attributes {dimension_semantics = [#tpu.dimension_semantics<parallel>], iteration_bounds = array<i64: 1>, scalar_prefetch = 0 : i64, scratch_operands = 0 : i64, tpu.core_type = #tpu.core_type<tc>, window_params = [{transform_indices = @transform_0, window_bounds = array<i64: 2, 8, 1>}, {transform_indices = @transform_1, window_bounds = array<i64: 2, 8, 1>}, {pipeline_mode = #tpu.pipeline_mode<synchronous>, transform_indices = @transform_2, window_bounds = array<i64: 64, 128>}, {pipeline_mode = #tpu.pipeline_mode<synchronous>, transform_indices = @transform_3, window_bounds = array<i64: 1, 128>}, {pipeline_mode = #tpu.pipeline_mode<synchronous>, transform_indices = @transform_4, window_bounds = array<i64: 1, 128>}, {transform_indices = @transform_5, window_bounds = array<i64: 8, 128>}, {}, {transform_indices = @transform_7, window_bounds = array<i64: 2, 8, 128>}]} {
    %c0 = arith.constant 0 : index
    %c0_0 = arith.constant 0 : index
    %c0_1 = arith.constant 0 : index
    %0 = vector.load %arg1[%c0, %c0_0, %c0_1] : memref<2x8x1xi32, #tpu.memory_space<vmem>>, vector<2x8x1xi32>
    %1 = vector.shape_cast %0 : vector<2x8x1xi32> to vector<16x1xi32>
    %2 = tpu.iota {dimensions = array<i32: 1>} : vector<16x64xi32>
    %3 = vector.broadcast %1 : vector<16x1xi32> to vector<16x64xi32>
    %4 = arith.cmpi eq, %2, %3 : vector<16x64xi32>
    %5 = arith.extui %4 : vector<16x64xi1> to vector<16x64xi32>
    %6 = arith.sitofp %5 : vector<16x64xi32> to vector<16x64xf32>
    %7 = arith.truncf %6 : vector<16x64xf32> to vector<16x64xbf16>
    %c0_2 = arith.constant 0 : index
    %c0_3 = arith.constant 0 : index
    %8 = vector.load %arg3[%c0_2, %c0_3] : memref<64x128xf32, #tpu.memory_space<vmem>>, vector<64x128xf32>
    %9 = arith.truncf %8 : vector<64x128xf32> to vector<64x128xbf16>
    %10 = arith.extf %9 : vector<64x128xbf16> to vector<64x128xf32>
    %11 = arith.subf %8, %10 : vector<64x128xf32>
    %12 = arith.truncf %11 : vector<64x128xf32> to vector<64x128xbf16>
    %cst = arith.constant dense<0.000000e+00> : vector<16x128xf32>
    %13 = tpu.matmul %7, %9, %cst {dimension_numbers = #tpu.dot_dimension_numbers<[1], [0], [0], [1], [0, 0, 1, 1], [], []>} : vector<16x64xbf16>, vector<64x128xbf16>, vector<16x128xf32> -> vector<16x128xf32>
    %cst_4 = arith.constant dense<0.000000e+00> : vector<16x128xf32>
    %14 = tpu.matmul %7, %12, %cst_4 {dimension_numbers = #tpu.dot_dimension_numbers<[1], [0], [0], [1], [0, 0, 1, 1], [], []>} : vector<16x64xbf16>, vector<64x128xbf16>, vector<16x128xf32> -> vector<16x128xf32>
    %15 = arith.addf %13, %14 : vector<16x128xf32>
    %16 = vector.shape_cast %15 : vector<16x128xf32> to vector<2x8x128xf32>
    %c0_5 = arith.constant 0 : index
    %c0_6 = arith.constant 0 : index
    %c0_7 = arith.constant 0 : index
    %17 = vector.load %arg2[%c0_5, %c0_6, %c0_7] : memref<2x8x1xf32, #tpu.memory_space<vmem>>, vector<2x8x1xf32>
    %18 = vector.broadcast %17 : vector<2x8x1xf32> to vector<2x8x128xf32>
    %19 = arith.mulf %16, %18 : vector<2x8x128xf32>
    %c0_8 = arith.constant 0 : index
    %c0_9 = arith.constant 0 : index
    %20 = vector.load %arg4[%c0_8, %c0_9] : memref<1x128xf32, #tpu.memory_space<vmem>>, vector<1x128xf32>
    %21 = vector.shape_cast %20 : vector<1x128xf32> to vector<1x1x128xf32>
    %c0_10 = arith.constant 0 : index
    %c0_11 = arith.constant 0 : index
    %22 = vector.load %arg5[%c0_10, %c0_11] : memref<1x128xf32, #tpu.memory_space<vmem>>, vector<1x128xf32>
    %23 = vector.shape_cast %22 : vector<1x128xf32> to vector<1x1x128xf32>
    %cst_12 = arith.constant dense<0.000000e+00> : vector<2x8xf32>
    %24 = vector.multi_reduction <add>, %19, %cst_12 [2] : vector<2x8x128xf32> to vector<2x8xf32>
    %25 = vector.shape_cast %24 : vector<2x8xf32> to vector<2x8x1xf32>
    %cst_13 = arith.constant 1.280000e+02 : f32
    %26 = vector.broadcast %cst_13 : f32 to vector<2x8x1xf32>
    %27 = arith.divf %25, %26 : vector<2x8x1xf32>
    %28 = vector.broadcast %27 : vector<2x8x1xf32> to vector<2x8x128xf32>
    %29 = arith.subf %19, %28 : vector<2x8x128xf32>
    %30 = arith.mulf %29, %29 : vector<2x8x128xf32>
    %cst_14 = arith.constant dense<0.000000e+00> : vector<2x8xf32>
    %31 = vector.multi_reduction <add>, %30, %cst_14 [2] : vector<2x8x128xf32> to vector<2x8xf32>
    %32 = vector.shape_cast %31 : vector<2x8xf32> to vector<2x8x1xf32>
    %cst_15 = arith.constant 1.280000e+02 : f32
    %33 = vector.broadcast %cst_15 : f32 to vector<2x8x1xf32>
    %34 = arith.divf %32, %33 : vector<2x8x1xf32>
    %cst_16 = arith.constant 9.99999974E-6 : f32
    %35 = vector.broadcast %cst_16 : f32 to vector<2x8x1xf32>
    %36 = arith.addf %34, %35 : vector<2x8x1xf32>
    %37 = math.rsqrt %36 : vector<2x8x1xf32>
    %38 = vector.broadcast %37 : vector<2x8x1xf32> to vector<2x8x128xf32>
    %39 = arith.mulf %29, %38 : vector<2x8x128xf32>
    %40 = vector.broadcast %21 : vector<1x1x128xf32> to vector<2x8x128xf32>
    %41 = arith.mulf %39, %40 : vector<2x8x128xf32>
    %42 = vector.broadcast %23 : vector<1x1x128xf32> to vector<2x8x128xf32>
    %43 = arith.addf %41, %42 : vector<2x8x128xf32>
    %c0_17 = arith.constant 0 : index
    %c0_18 = arith.constant 0 : index
    %44 = vector.load %arg6[%c0_17, %c0_18] : memref<8x128xf32, #tpu.memory_space<vmem>>, vector<8x128xf32>
    %45 = vector.shape_cast %44 : vector<8x128xf32> to vector<1x8x128xf32>
    %46 = vector.broadcast %45 : vector<1x8x128xf32> to vector<2x8x128xf32>
    %47 = arith.addf %43, %46 : vector<2x8x128xf32>
    %48 = arith.truncf %47 : vector<2x8x128xf32> to vector<2x8x128xbf16>
    %c0_19 = arith.constant 0 : index
    %c0_20 = arith.constant 0 : index
    %c0_21 = arith.constant 0 : index
    %49 = vector.load %arg8[%c0_19, %c0_20, %c0_21] : memref<2x8x128xbf16, #tpu.memory_space<vmem>>, vector<2x8x128xbf16>
    tpu.vector_store %arg8[%c0_19, %c0_20, %c0_21], %48 {strides = array<i32>} : memref<2x8x128xbf16, #tpu.memory_space<vmem>>, vector<2x8x128xbf16>,
    return
  }
  func.func @transform_0(%arg0: i32) -> (i32, i32, i32) {
    %c0_i32 = arith.constant 0 : i32
    %c0_i32_0 = arith.constant 0 : i32
    %c0_i32_1 = arith.constant 0 : i32
    return %c0_i32, %arg0, %c0_i32_0 : i32, i32, i32
  }
  func.func @transform_1(%arg0: i32) -> (i32, i32, i32) {
    %c0_i32 = arith.constant 0 : i32
    %c0_i32_0 = arith.constant 0 : i32
    %c0_i32_1 = arith.constant 0 : i32
    return %c0_i32, %arg0, %c0_i32_0 : i32, i32, i32
  }
  func.func @transform_2(%arg0: i32) -> (i32, i32) {
    %c0_i32 = arith.constant 0 : i32
    %c0_i32_0 = arith.constant 0 : i32
    %c0_i32_1 = arith.constant 0 : i32
    return %c0_i32, %c0_i32_0 : i32, i32
  }
  func.func @transform_3(%arg0: i32) -> (i32, i32) {
    %c0_i32 = arith.constant 0 : i32
    %c0_i32_0 = arith.constant 0 : i32
    %c0_i32_1 = arith.constant 0 : i32
    return %c0_i32, %c0_i32_0 : i32, i32
  }
  func.func @transform_4(%arg0: i32) -> (i32, i32) {
    %c0_i32 = arith.constant 0 : i32
    %c0_i32_0 = arith.constant 0 : i32
    %c0_i32_1 = arith.constant 0 : i32
    return %c0_i32, %c0_i32_0 : i32, i32
  }
  func.func @transform_5(%arg0: i32) -> (i32, i32) {
    %c0_i32 = arith.constant 0 : i32
    %0 = arith.addi %arg0, %c0_i32 : i32
    %c0_i32_0 = arith.constant 0 : i32
    %c0_i32_1 = arith.constant 0 : i32
    return %0, %c0_i32_0 : i32, i32
  }
  func.func @transform_7(%arg0: i32) -> (i32, i32, i32) {
    %c0_i32 = arith.constant 0 : i32
    %0 = arith.addi %arg0, %c0_i32 : i32
    %c0_i32_0 = arith.constant 0 : i32
    %c0_i32_1 = arith.constant 0 : i32
    %c0_i32_2 = arith.constant 0 : i32
    return %c0_i32_0, %0, %c0_i32_1 : i32, i32, i32
  }
}

</mosaic_0001>

<bundles_post_ra>
// kernel: tpu_custom_call.1
= control target key start
LH: loop header
LB: loop body
LE: loop exit
PB: predicated region body
PF: predicated region fallthrough
CT: control target
= control target key end

     0   :  { %12 = vsyncpa [#allocation3], 0  ;;  %s423_s0 = inlined_call_operand.vmem [shape: s32[2,8,1], index: 0, kind: input, shape index: {}]   ;;  %s424_s1 = inlined_call_operand.vmem [shape: f32[2,8,1], index: 1, kind: input, shape index: {}]   ;;  %s425_s2 = inlined_call_operand.vmem [shape: f32[64,128], index: 2, kind: input, shape index: {}]   ;;  %s426_s3 = inlined_call_operand.vmem [shape: f32[1,128], index: 3, kind: input, shape index: {}]   ;;  %s427_s4 = inlined_call_operand.vmem [shape: f32[1,128], index: 4, kind: input, shape index: {}]   ;;  %s428_s5 = inlined_call_operand.hbm [shape: f32[1024,128], index: 5, kind: input, shape index: {}]   ;;  %s429_s6 = inlined_call_operand.hbm [shape: bf16[2,24,128], index: 6, kind: input, shape index: {}, may-alias: {6,7}]   ;;  %s430_s7 = inlined_call_operand.hbm [shape: bf16[2,24,128], index: 7, kind: output, shape index: {}, may-alias: {6,7}]  }
   0x1   :  { %13 = vsyncpa [#allocation4], 0  ;;  %s29_s26 = sshll.u32 %s428_s5, 4  ;;  %s327_s27 = smov [#allocation2]   ;;  %s30_s26 = int_to_ptr.hbm [resolvable:$true] %s29_s26 }
   0x2   :  { %s31_s28 = sshll.u32 %s327_s27, 4  ;;  %s32_s28 = int_to_ptr.vmem [resolvable:$true] %s31_s28 }
   0x3   :  { %34 = dma.hbm_to_vmem [thread:$0]  %s30_s26, 128, %s32_s28, [#allocation3]  }
   0x4   :  { %323 = dma.done.wait [#allocation3], 128  }
   0x5   :  { %324 = vsyncadd [#allocation3], 4294967168  ;;  %v328_v0 = vmov 0   ;;  %v40_v1 = vld [vmem:[%s423_s0] sm:$0xff]  ;;  %v63_v2 = vld [vmem:[%s425_s2 + $0x30] sm:$0xff]  ;;  %v42_v53 = vlaneseq  ;;  %v329_v57 = vmov 0.0  }
   0x6   :  { %265 = vset.pattern.permute.xlu0 %v328_v0  ;;  %266 = vset.pattern.permute.xlu1 %v328_v0  ;;  %v64_v3 = vld [vmem:[%s425_s2 + $0x38] sm:$0xff]  ;;  %v71_v4 = vpack.c.bf16 %v63_v2, %v63_v2  ;;  %v41_v11 = vld [vmem:[%s423_s0 + $0x8] sm:$0xff]  ;;  %v61_v15 = vld [vmem:[%s425_s2 + $0x20] sm:$0xff]  ;;  %vm93_vm2 = vcmask 523264   ;;  %s331_s6 = smov [#allocation5]   ;;  %s235_s8 = sshll.u32 %s430_s7, 4  ;;  %s236_s8 = int_to_ptr.hbm [resolvable:$true] %s235_s8 }
   0x7   :  { %45 = vperm.xlu0 %265, %v40_v1   ;;  %v72_v5 = vpack.c.bf16 %v64_v3, %v64_v3  ;;  %v62_v16 = vld [vmem:[%s425_s2 + $0x28] sm:$0xff]  ;;  %v69_v17 = vpack.c.bf16 %v61_v15, %v61_v15  ;;  %v59_v21 = vld [vmem:[%s425_s2 + $0x10] sm:$0xff]  ;;  %v60_v22 = vld [vmem:[%s425_s2 + $0x18] sm:$0xff]  ;;  %v43_v55 = vand.u32 127, %v42_v53  ;;  %s233_s29 = sshll.u32 %s331_s6, 4  ;;  %s333_s5 = smov 192   ;;  %s234_s29 = int_to_ptr.vmem [resolvable:$true] %s233_s29 }
   0x8   :  { %v79_v6 = vunpack.c.l.bf16 %v71_v4  ;;  %v125_v7 = vunpack.c.l.b16 %v71_v4  ;;  %v70_v18 = vpack.c.bf16 %v62_v16, %v62_v16  ;;  %v67_v27 = vpack.c.bf16 %v59_v21, %v59_v21  ;;  %v57_v33 = vld [vmem:[%s425_s2] sm:$0xff]  ;;  %v58_v34 = vld [vmem:[%s425_s2 + $0x8] sm:$0xff]  ;;  %s334_s9 = smov 4  }
   0x9   :  { %v80_v8 = vunpack.c.l.bf16 %v72_v5  ;;  %v126_v9 = vunpack.c.l.b16 %v72_v5  ;;  %v77_v19 = vunpack.c.l.bf16 %v69_v17  ;;  %v123_v25 = vunpack.c.l.b16 %v69_v17  ;;  %v149_v51 = vld [vmem:[%s424_s1] sm:$0xff]  ;;  %v150_v52 = vld [vmem:[%s424_s1 + $0x8] sm:$0xff] }
   0xa   :  { %v87_v10 = vsub.f32 %v63_v2, %v79_v6  ;;  %v78_v20 = vunpack.c.l.bf16 %v70_v18  ;;  %v124_v26 = vunpack.c.l.b16 %v70_v18  ;;  %v68_v28 = vpack.c.bf16 %v60_v22, %v60_v22  ;;  %153 = vperm.xlu1 %266, %v149_v51  }
   0xb   :  { %v88_v12 = vsub.f32 %v64_v3, %v80_v8  ;;  %v130_v13 = vpack.c.b16 %v126_v9, %v125_v7  ;;  %v85_v23 = vsub.f32 %v61_v15, %v77_v19  ;;  %v75_v31 = vunpack.c.l.bf16 %v67_v27 }
   0xc   :  { %v86_v24 = vsub.f32 %v62_v16, %v78_v20  ;;  %v129_v30 = vpack.c.b16 %v124_v26, %v123_v25  ;;  %v76_v32 = vunpack.c.l.bf16 %v68_v28  ;;  %v121_v35 = vunpack.c.l.b16 %v67_v27 }
   0xd   :  { %v92_v14 = vpack.c.bf16 %v88_v12, %v87_v10  ;;  %139 = vmatpush.bf16.msra.mxu1 %v130_v13  ;;  %v122_v36 = vunpack.c.l.b16 %v68_v28  ;;  %v65_v37 = vpack.c.bf16 %v57_v33, %v57_v33  ;;  %v66_v38 = vpack.c.bf16 %v58_v34, %v58_v34 }
   0xe   :  { %v91_v29 = vpack.c.bf16 %v86_v24, %v85_v23  ;;  %v83_v39 = vsub.f32 %v59_v21, %v75_v31  ;;  %v84_v40 = vsub.f32 %v60_v22, %v76_v32  ;;  %v330_v7 = vmov 128.0  }
   0xf   :  { %48 = vperm.xlu0 %265, %v41_v11   ;;  %101 = vmatpush.bf16.msra.mxu0 %v92_v14  ;;  %v128_v41 = vpack.c.b16 %v122_v36, %v121_v35  ;;  %v73_v42 = vunpack.c.l.bf16 %v65_v37  ;;  %v74_v43 = vunpack.c.l.bf16 %v66_v38  ;;  %v119_v47 = vunpack.c.l.b16 %v65_v37 }
  0x10   :  { %v90_v44 = vpack.c.bf16 %v84_v40, %v83_v39  ;;  %v120_v48 = vunpack.c.l.b16 %v66_v38  ;;  %269 = vrcp.f32 %v330_v7  ;;  %v267_v39 = vld [vmem:[%s426_s3] ss:$0 sm:$0xff] }
  0x11   :  { %140 = vmatpush.bf16.msra.mxu1 %v129_v30  ;;  %v81_v45 = vsub.f32 %v57_v33, %v73_v42  ;;  %v82_v46 = vsub.f32 %v58_v34, %v74_v43  ;;  %v268_v43 = vld [vmem:[%s427_s4] ss:$0 sm:$0xff]  ;;  %s332_s4 = smov 64  }
  0x12   :  { %v127_v50 = vpack.c.b16 %v120_v48, %v119_v47  ;;  %158 = vperm.xlu1 %266, %v150_v52  }
  0x13   :  { %102 = vmatpush.bf16.msra.mxu0 %v91_v29  ;;  %v89_v49 = vpack.c.bf16 %v82_v46, %v81_v45 }
  0x15   :  { %141 = vmatpush.bf16.msra.mxu1 %v128_v41 }
  0x16   :  { %v270_v8 = vpop.eup %269 }
  0x17   :  { %103 = vmatpush.bf16.msra.mxu0 %v90_v44  ;;  %v170_v9 = vmul.f32 128.0, %v270_v8  ;;  %vm174_vm3 = vweird.f32 %v270_v8 }
  0x19   :  { %142 = vmatpush.bf16.msra.mxu1 %v127_v50  ;;  %v171_v10 = vsub.f32 1.0, %v170_v9 }
  0x1b   :  { %104 = vmatpush.bf16.msra.mxu0 %v89_v49  ;;  %v172_v11 = vmul.f32 %v270_v8, %v171_v10  ;;  %v222_v49 = vld [vmem:[#allocation2] sm:$0xff] }
  0x1d   :  { %v173_v12 = vadd.f32 %v270_v8, %v172_v11 }
  0x1f   :  { %v175_v13 = vsel %vm174_vm3, %v270_v8, %v173_v12 }
  0x79   :  { %v46_v54 = vpop.permute.xlu0 %45 }
  0x7a   :  { %vm50_vm0 = vcmp.eq.s32.totalorder %v43_v55, %v46_v54 }
  0x7b   :  { %v248_v58 = vsel %vm50_vm0, 1.0, %v329_v57 }
  0x7c   :  { %v154_v61 = vpop.permute.xlu1 %153 }
  0x81   :  { %v49_v56 = vpop.permute.xlu0 %48 }
  0x82   :  { %vm51_vm1 = vcmp.eq.s32.totalorder %v43_v55, %v49_v56 }
  0x83   :  { %v249_v59 = vsel %vm51_vm1, 1.0, %v329_v57 }
  0x84   :  { %v56_v60 = vpack.c.bf16 %v249_v59, %v248_v58  ;;  %v159_v5 = vpop.permute.xlu1 %158 }
  0x86   :  { %250 = vmatmul.msk.bf16.vlgmr.msra.gmra.mxu0 %vm93_vm2, %v56_v60  ;;  %251 = vmatmul.msk.bf16.vlgmr.msra.gmra.mxu1 %vm93_vm2, %v56_v60 }
 0x103   :  { %v106_v62 = vpop.f32.mrf.mxu0  ;;  %v144_v63 = vpop.f32.mrf.mxu1 }
 0x104   :  { %v145_v0 = vadd.f32 %v144_v63, %v106_v62 }
 0x106   :  { %v161_v1 = vmul.f32 %v154_v61, %v145_v0 }
 0x108   :  { %165 = vadd.xlane.f32.xlu2 %v161_v1 }
 0x10b   :  { %v108_v2 = vpop.f32.mrf.mxu0  ;;  %v146_v3 = vpop.f32.mrf.mxu1 }
 0x10c   :  { %v147_v4 = vadd.f32 %v146_v3, %v108_v2 }
 0x10e   :  { %v162_v6 = vmul.f32 %v159_v5, %v147_v4 }
 0x110   :  { %167 = vadd.xlane.f32.xlu2 %v162_v6 }
 0x17b   :  { %v166_v14 = vpop.xlane.xlu2 %165 }
 0x17c   :  { %v176_v15 = vmul.f32 %v175_v13, %v166_v14 }
 0x17e   :  { %v178_v16 = vsub.f32 %v161_v1, %v176_v15 }
 0x180   :  { %v180_v17 = vmul.f32 %v178_v16, %v178_v16 }
 0x182   :  { %182 = vadd.xlane.f32.xlu0 %v180_v17 }
 0x183   :  { %v168_v18 = vpop.xlane.xlu2 %167 }
 0x184   :  { %v177_v19 = vmul.f32 %v175_v13, %v168_v18 }
 0x186   :  { %v179_v20 = vsub.f32 %v162_v6, %v177_v19 }
 0x188   :  { %v181_v21 = vmul.f32 %v179_v20, %v179_v20 }
 0x18a   :  { %184 = vadd.xlane.f32.xlu1 %v181_v21 }
 0x1f5   :  { %v183_v22 = vpop.xlane.xlu0 %182 }
 0x1f6   :  { %v186_v23 = vmul.f32 %v183_v22, %v175_v13 }
 0x1f8   :  { %v188_v24 = vadd.f32 1e-05, %v186_v23 }
 0x1fa   :  { %271 = vrsqrt.f32 %v188_v24  ;;  %vm196_vm5 = vweird.f32 %v188_v24 }
 0x1fd   :  { %v185_v25 = vpop.xlane.xlu1 %184 }
 0x1fe   :  { %v187_v26 = vmul.f32 %v185_v25, %v175_v13 }
 0x200   :  { %v272_v27 = vpop.eup %271  ;;  %v189_v28 = vadd.f32 1e-05, %v187_v26 }
 0x201   :  { %v191_v29 = vmul.f32 %v272_v27, %v188_v24  ;;  %vm197_vm4 = vweird.f32 %v272_v27 }
 0x202   :  { %273 = vrsqrt.f32 %v189_v28  ;;  %vm198_vm6 = vmor %vm196_vm5, %vm197_vm4  ;;  %vm206_vm8 = vweird.f32 %v189_v28 }
 0x203   :  { %v192_v30 = vmul.f32 %v272_v27, %v191_v29 }
 0x205   :  { %v193_v31 = vmul.f32 0.5, %v192_v30 }
 0x207   :  { %v194_v32 = vsub.f32 1.5, %v193_v31 }
 0x208   :  { %v274_v33 = vpop.eup %273 }
 0x209   :  { %v195_v34 = vmul.f32 %v272_v27, %v194_v32  ;;  %v201_v35 = vmul.f32 %v274_v33, %v189_v28  ;;  %vm207_vm7 = vweird.f32 %v274_v33 }
 0x20a   :  { %vm208_vm9 = vmor %vm206_vm8, %vm207_vm7 }
 0x20b   :  { %v199_v36 = vsel %vm198_vm6, %v272_v27, %v195_v34  ;;  %v202_v37 = vmul.f32 %v274_v33, %v201_v35 }
 0x20c   :  { %v210_v40 = vmul.f32 %v199_v36, %v178_v16 }
 0x20d   :  { %v203_v38 = vmul.f32 0.5, %v202_v37 }
 0x20e   :  { %v215_v44 = vmul.f32 %v267_v39, %v210_v40 }
 0x20f   :  { %v204_v41 = vsub.f32 1.5, %v203_v38 }
 0x210   :  { %v220_v47 = vadd.f32 %v268_v43, %v215_v44 }
 0x211   :  { %v205_v42 = vmul.f32 %v274_v33, %v204_v41 }
 0x212   :  { %v223_v51 = vadd.f32 %v222_v49, %v220_v47 }
 0x213   :  { %v209_v45 = vsel %vm208_vm9, %v274_v33, %v205_v42 }
 0x214   :  { %v211_v46 = vmul.f32 %v209_v45, %v179_v20 }
 0x216   :  { %v216_v48 = vmul.f32 %v267_v39, %v211_v46 }
 0x218   :  { %v221_v50 = vadd.f32 %v268_v43, %v216_v48 }
 0x21a   :  { %v224_v52 = vadd.f32 %v222_v49, %v221_v50 }
 0x21c   :  { %v255_v53 = vpack.c.bf16 %v224_v52, %v223_v51 }
 0x21e   :  { %256 = vst [vmem:[#allocation5] sm:$0xff] %v255_v53  }
 0x21f   :  { %241 = dma.vmem_to_hbm [thread:$0]  %s234_s29, 128, %s236_s8, [#allocation4], %s332_s4, %s333_s5, %s334_s9  }
 0x220   :  { %325 = dma.done.wait [#allocation4], 128  }
 0x221   :  { %326 = vsyncadd [#allocation4], 4294967168 }
 0x222   :  { %246 = vsyncpa [#allocation3], 1 }
 0x223   :  { %247 = vsyncpa [#allocation4], 1 }

</bundles_post_ra>
